<compile_context>
chip_gen: v6e
topology: v6e:2x2x1
jax: 0.10.0
libtpu: 0.0.40
codegen_flags: <defaults>
</compile_context>

<pallas_src>
import functools

import jax
import jax.numpy as jnp
from jax import lax
from jax.experimental import pallas as pl
from jax.experimental.pallas import tpu as pltpu

_SQRT_HALF = 0.7071067811865476
_VMEM_LIMIT_BYTES = 32 * 1024 * 1024  # safe on every generation (v7x has 64 MiB)


def _gelu_exact(x):
    # Matches torch.nn.GELU() default (erf-based, exact).  erf goes to the EUP.
    return 0.5 * x * (1.0 + lax.erf(x * _SQRT_HALF))


def _round_up(v, m):
    return (v + m - 1) // m * m


def _resblock_kernel(x_ref, w_ref, b_ref, o_ref, *, matmul_dtype):
    # x_ref: (tile_b, D_pad) f32    w_ref: (D_pad, D_pad) matmul_dtype (resident)
    # b_ref: (1, D_pad) f32         o_ref: (tile_b, D_pad) f32
    x = x_ref[...]  # residual path stays f32

    # MXU matmul with (possibly) reduced-precision inputs, f32 accumulation.
    h = jnp.dot(x.astype(matmul_dtype), w_ref[...],
                preferred_element_type=jnp.float32)
    h = h + b_ref[...]                        # bias add in f32 (VPU)
    o_ref[...] = (x + _gelu_exact(h)).astype(o_ref.dtype)


def _pick_tile_b(tile_b_req, B, D_pad, w_itemsize):
    """Largest sublane-aligned batch tile <= request that fits the VMEM budget."""
    tile_b = max(8, min(_round_up(tile_b_req, 8), _round_up(B, 8)))
    resident = 2 * D_pad * D_pad * w_itemsize + 2 * D_pad * 4  # W + bias (x2 buf)
    budget = int(_VMEM_LIMIT_BYTES * 0.85) - resident
    # Streaming tiles: x + out, double-buffered, f32.
    per_row = 2 * 2 * D_pad * 4
    if budget > per_row * 8:
        max_tile = (budget // per_row) // 8 * 8
        tile_b = min(tile_b, max_tile)
    else:
        tile_b = 8  # tiny fallback; weight dominates VMEM
    return max(8, tile_b)


def resblock_forward(x, w, b, *, tile_b=256, matmul_dtype=jnp.bfloat16):
    """ResBlock forward: out = x + GELU(x @ w + b).

    x: (B, D) float32.
    w: (D, D) float32, already transposed to (in_features, out_features).
    b: (D,) or (1, D) float32.
    """
    B, D = x.shape
    assert w.shape == (D, D)
    b = jnp.asarray(b).reshape(1, D)

    # Pad features to a lane multiple (128): lane-dense vregs + full vector stores.
    D_pad = _round_up(D, 128)
    w_itemsize = jnp.dtype(matmul_dtype).itemsize
    tile_b = _pick_tile_b(tile_b, B, D_pad, w_itemsize)
    B_pad = _round_up(B, tile_b)

    x_p = jnp.pad(x.astype(jnp.float32), ((0, B_pad - B), (0, D_pad - D)))
    # Cast the weight once in the wrapper: halves its DMA traffic / VMEM footprint.
    w_p = jnp.pad(w.astype(jnp.float32),
                  ((0, D_pad - D), (0, D_pad - D))).astype(matmul_dtype)
    b_p = jnp.pad(b.astype(jnp.float32), ((0, 0), (0, D_pad - D)))

    grid = (B_pad // tile_b,)
    kernel = functools.partial(_resblock_kernel, matmul_dtype=matmul_dtype)

    cost = pl.CostEstimate(
        flops=2 * B_pad * D_pad * D_pad + 4 * B_pad * D_pad,
        transcendentals=B_pad * D_pad,
        bytes_accessed=(x_p.size * 4 + w_p.size * w_itemsize
                        + b_p.size * 4 + B_pad * D_pad * 4),
    )

    out = pl.pallas_call(
        kernel,
        out_shape=jax.ShapeDtypeStruct((B_pad, D_pad), jnp.float32),
        grid_spec=pltpu.PrefetchScalarGridSpec(
            num_scalar_prefetch=0,
            grid=grid,
            in_specs=[
                pl.BlockSpec((tile_b, D_pad), lambda i: (i, 0)),   # x tile (streamed)
                pl.BlockSpec((D_pad, D_pad), lambda i: (0, 0)),    # W (resident)
                pl.BlockSpec((1, D_pad), lambda i: (0, 0)),        # bias (resident)
            ],
            out_specs=pl.BlockSpec((tile_b, D_pad), lambda i: (i, 0)),
        ),
        compiler_params=pltpu.CompilerParams(
            # Batch tiles are independent -> shard across TCs on v7x megacore.
            dimension_semantics=("parallel",),
            vmem_limit_bytes=_VMEM_LIMIT_BYTES,
        ),
        cost_estimate=cost,
    )(x_p, w_p, b_p)

    return out[:B, :D]


def resblock_reference(x, w, b):
    """Pure-JAX f32 reference."""
    return x + jax.nn.gelu(x @ w + b.reshape(1, -1), approximate=False)


if __name__ == "__main__":
    # Small demo shapes, deliberately NOT lane/tile aligned to exercise padding.
    batch, bottleneck = 200, 96

    key = jax.random.PRNGKey(0)
    kx, kw, kb = jax.random.split(key, 3)
    x = jax.random.normal(kx, (batch, bottleneck), dtype=jnp.float32)
    bound = 1.0 / float(jnp.sqrt(jnp.float32(bottleneck)))
    # torch Linear stores weight as (out, in); we keep the (in, out) transpose here.
    w = jax.random.uniform(kw, (bottleneck, bottleneck), jnp.float32, -bound, bound)
    b = jax.random.uniform(kb, (bottleneck,), jnp.float32, -bound, bound)

    ref = resblock_reference(x, w, b)

    # Default path: single batch tile, bf16 MXU inputs, f32 accumulation.
    out = jax.block_until_ready(resblock_forward(x, w, b, tile_b=256))
    assert out.shape == (batch, bottleneck)
    assert jnp.allclose(out, ref, atol=5e-2, rtol=5e-2), float(
        jnp.max(jnp.abs(out - ref)))

    # Multi-tile grid path (tile_b < batch) to exercise streaming + padding.
    out_multi = jax.block_until_ready(resblock_forward(x, w, b, tile_b=64))
    assert jnp.allclose(out_multi, ref, atol=5e-2, rtol=5e-2), float(
        jnp.max(jnp.abs(out_multi - ref)))

    # Full-precision path for a tight numerical check.
    out_f32 = jax.block_until_ready(
        resblock_forward(x, w, b, tile_b=256, matmul_dtype=jnp.float32))
    assert jnp.allclose(out_f32, ref, atol=1e-4, rtol=1e-4), float(
        jnp.max(jnp.abs(out_f32 - ref)))

    print("KERNEL_OK")
</pallas_src>

<mosaic_0001>
module attributes {stable_mosaic.version = 11 : i64} {
  func.func @_resblock_kernel(%arg0: i32, %arg1: memref<200x128xf32, #tpu.memory_space<vmem>>, %arg2: memref<128x128xbf16, #tpu.memory_space<vmem>>, %arg3: memref<1x128xf32, #tpu.memory_space<vmem>>, %arg4: memref<200x128xf32, #tpu.memory_space<vmem>>) attributes {dimension_semantics = [#tpu.dimension_semantics<parallel>], iteration_bounds = array<i64: 1>, scalar_prefetch = 0 : i64, scratch_operands = 0 : i64, tpu.core_type = #tpu.core_type<tc>, window_params = [{transform_indices = @transform_0, window_bounds = array<i64: 200, 128>}, {pipeline_mode = #tpu.pipeline_mode<synchronous>, transform_indices = @transform_1, window_bounds = array<i64: 128, 128>}, {pipeline_mode = #tpu.pipeline_mode<synchronous>, transform_indices = @transform_2, window_bounds = array<i64: 1, 128>}, {transform_indices = @transform_3, window_bounds = array<i64: 200, 128>}]} {
    %c0 = arith.constant 0 : index
    %c0_0 = arith.constant 0 : index
    %0 = vector.load %arg1[%c0, %c0_0] : memref<200x128xf32, #tpu.memory_space<vmem>>, vector<200x128xf32>
    %1 = arith.truncf %0 : vector<200x128xf32> to vector<200x128xbf16>
    %c0_1 = arith.constant 0 : index
    %c0_2 = arith.constant 0 : index
    %2 = vector.load %arg2[%c0_1, %c0_2] : memref<128x128xbf16, #tpu.memory_space<vmem>>, vector<128x128xbf16>
    %cst = arith.constant dense<0.000000e+00> : vector<200x128xf32>
    %3 = tpu.matmul %1, %2, %cst {dimension_numbers = #tpu.dot_dimension_numbers<[1], [0], [0], [1], [0, 0, 1, 1], [], []>} : vector<200x128xbf16>, vector<128x128xbf16>, vector<200x128xf32> -> vector<200x128xf32>
    %c0_3 = arith.constant 0 : index
    %c0_4 = arith.constant 0 : index
    %4 = vector.load %arg3[%c0_3, %c0_4] : memref<1x128xf32, #tpu.memory_space<vmem>>, vector<1x128xf32>
    %5 = vector.broadcast %4 : vector<1x128xf32> to vector<200x128xf32>
    %6 = arith.addf %3, %5 : vector<200x128xf32>
    %cst_5 = arith.constant 5.000000e-01 : f32
    %7 = vector.broadcast %cst_5 : f32 to vector<200x128xf32>
    %8 = arith.mulf %7, %6 : vector<200x128xf32>
    %cst_6 = arith.constant 0.707106769 : f32
    %9 = vector.broadcast %cst_6 : f32 to vector<200x128xf32>
    %10 = arith.mulf %6, %9 : vector<200x128xf32>
    %11 = math.erf %10 : vector<200x128xf32>
    %cst_7 = arith.constant 1.000000e+00 : f32
    %12 = vector.broadcast %cst_7 : f32 to vector<200x128xf32>
    %13 = arith.addf %12, %11 : vector<200x128xf32>
    %14 = arith.mulf %8, %13 : vector<200x128xf32>
    %15 = arith.addf %0, %14 : vector<200x128xf32>
    %c0_8 = arith.constant 0 : index
    %c0_9 = arith.constant 0 : index
    %16 = vector.load %arg4[%c0_8, %c0_9] : memref<200x128xf32, #tpu.memory_space<vmem>>, vector<200x128xf32>
    tpu.vector_store %arg4[%c0_8, %c0_9], %15 {strides = array<i32>} : memref<200x128xf32, #tpu.memory_space<vmem>>, vector<200x128xf32>,
    return
  }
  func.func @transform_0(%arg0: i32) -> (i32, i32) {
    %c0_i32 = arith.constant 0 : i32
    %c0_i32_0 = arith.constant 0 : i32
    return %arg0, %c0_i32 : i32, i32
  }
  func.func @transform_1(%arg0: i32) -> (i32, i32) {
    %c0_i32 = arith.constant 0 : i32
    %c0_i32_0 = arith.constant 0 : i32
    %c0_i32_1 = arith.constant 0 : i32
    return %c0_i32, %c0_i32_0 : i32, i32
  }
  func.func @transform_2(%arg0: i32) -> (i32, i32) {
    %c0_i32 = arith.constant 0 : i32
    %c0_i32_0 = arith.constant 0 : i32
    %c0_i32_1 = arith.constant 0 : i32
    return %c0_i32, %c0_i32_0 : i32, i32
  }
  func.func @transform_3(%arg0: i32) -> (i32, i32) {
    %c0_i32 = arith.constant 0 : i32
    %c0_i32_0 = arith.constant 0 : i32
    return %arg0, %c0_i32 : i32, i32
  }
}

</mosaic_0001>

<bundles_post_ra>
// kernel: tpu_custom_call.1
= control target key start
LH: loop header
LB: loop body
LE: loop exit
PB: predicated region body
PF: predicated region fallthrough
CT: control target
= control target key end

     0   :  { %8 = vsyncpa [#allocation3], 0  ;;  %s1022_s0 = inlined_call_operand.hbm [shape: f32[200,128], index: 0, kind: input, shape index: {}]   ;;  %s1023_s1 = inlined_call_operand.hbm [shape: bf16[128,128], index: 1, kind: input, shape index: {}]   ;;  %s1024_s2 = inlined_call_operand.vmem [shape: f32[1,128], index: 2, kind: input, shape index: {}]   ;;  %s1025_s3 = inlined_call_operand.hbm [shape: f32[200,128], index: 3, kind: output, shape index: {}]  }
   0x1   :  { %9 = vsyncpa [#allocation6], 0 }
   0x2   :  { %10 = vsyncpa [#allocation4], 0  ;;  %s729_s12 = smov [#allocation2]  }
   0x3   :  { %s16_s13 = sshll.u32 %s729_s12, 4  ;;  %s17_s13 = int_to_ptr.vmem [resolvable:$true] %s16_s13 }
   0x4   :  { %s671_s14 = scalar_lea.vmem %s17_s13, 3200  ;;  %p676_p1 = scmp.lt.s32.totalorder %s17_s13, %s17_s13 }
   0x5   :  { %p672_p0 = scmp.ne.s32.totalorder %s17_s13, %s671_s14  ;;  %p677_p2 = scmp.lt.s32.totalorder %s671_s14, %s671_s14 }
   0x7   :  { %p678_p3 = por %p677_p2, %p676_p1 }
   0x9   :  { %p679_p4 = pnand %p678_p3, %p672_p0 }
   0xb   :  { %682 = shalt.err (!%p679_p4)
}
   0xc   :  { %s730_s15 = smov 128   ;;  %s731_s16 = smov 8  }
   0xd   :  { %22 = dma.hbm_to_vmem [thread:$0]  %s1022_s0, 3200, %s17_s13, [#allocation3], %s730_s15, %s730_s15, %s731_s16  }
   0xe   :  { %s732_s19 = smov [#allocation5]  }
   0xf   :  { %s28_s20 = sshll.u32 %s732_s19, 4  ;;  %s29_s20 = int_to_ptr.vmem [resolvable:$true] %s28_s20 }
  0x10   :  { %s691_s21 = scalar_lea.vmem %s29_s20, 1024  ;;  %p696_p6 = scmp.lt.s32.totalorder %s29_s20, %s29_s20 }
  0x11   :  { %p692_p5 = scmp.ne.s32.totalorder %s29_s20, %s691_s21  ;;  %p697_p7 = scmp.lt.s32.totalorder %s691_s21, %s691_s21 }
  0x13   :  { %p698_p8 = por %p697_p7, %p696_p6 }
  0x15   :  { %p699_p9 = pnand %p698_p8, %p692_p5 }
  0x17   :  { %702 = shalt.err (!%p699_p9)
}
  0x18   :  { %s733_s22 = smov 64   ;;  %s734_s23 = smov 4  }
  0x19   :  { %34 = dma.hbm_to_vmem [thread:$0]  %s1023_s1, 1024, %s29_s20, [#allocation6], %s733_s22, %s733_s22, %s734_s23  }
  0x1a   :  { %723 = dma.done.wait [#allocation3], 3200  }
  0x1b   :  { %724 = vsyncadd [#allocation3], 4294964096 }
  0x1c   :  { %725 = dma.done.wait [#allocation6], 1024  }
  0x1d   :  { %726 = vsyncadd [#allocation6], 4294966272  ;;  %v735_v0 = vmov 0.0   ;;  %vm736_vm0 = vmmov 0   ;;  %v605_v1 = vld [vmem:[#allocation5 + $0x38] sm:$0xff]   ;;  %v606_v2 = vld [vmem:[#allocation5 + $0x30] sm:$0xff]  }
  0x1e   :  { %512 = vmatprep.subr.bf16.mxu0 %v735_v0  ;;  %580 = vmatprep.subr.bf16.mxu1 %v735_v0  ;;  %v607_v3 = vld [vmem:[#allocation5 + $0x28] sm:$0xff]   ;;  %v608_v4 = vld [vmem:[#allocation5 + $0x20] sm:$0xff]   ;;  %v609_v5 = vld [vmem:[#allocation5 + $0x18] sm:$0xff]  }
  0x1f   :  { %528 = vmatprep.mubr.msk.bf16.mxu0 %vm736_vm0, %v735_v0  ;;  %556 = vmatprep.mubr.msk.bf16.mxu1 %vm736_vm0, %v735_v0  ;;  %v610_v6 = vld [vmem:[#allocation5 + $0x10] sm:$0xff]   ;;  %v611_v7 = vld [vmem:[#allocation5 + $0x8] sm:$0xff]   ;;  %v612_v8 = vld [vmem:[#allocation5] sm:$0xff]  }
  0x20   :  { %513 = vmatpush3.bf16.msra.mxu0 %v605_v1  ;;  %588 = vmatpush3.bf16.msra.mxu1 %v605_v1  ;;  %v785_v9 = vld [vmem:[#allocation2] sm:$0xff]  ;;  %v787_v10 = vld [vmem:[#allocation2 + $0x8] sm:$0xff]  ;;  %v789_v11 = vld [vmem:[#allocation2 + $0x70] sm:$0xff] }
  0x21   :  { %514 = vmatprep.subr.bf16.mxu0 %v735_v0  ;;  %581 = vmatprep.subr.bf16.mxu1 %v735_v0  ;;  %v791_v12 = vld [vmem:[#allocation2 + $0x78] sm:$0xff]  ;;  %v69_v13 = vpack.c.bf16 %v787_v10, %v785_v9  ;;  %v799_v15 = vld [vmem:[#allocation2 + $0x10] sm:$0xff]  ;;  %v807_v17 = vld [vmem:[#allocation2 + $0x80] sm:$0xff] }
  0x22   :  { %v76_v14 = vpack.c.bf16 %v791_v12, %v789_v11  ;;  %v805_v16 = vld [vmem:[#allocation2 + $0x18] sm:$0xff]  ;;  %v809_v18 = vld [vmem:[#allocation2 + $0x88] sm:$0xff]  ;;  %v815_v21 = vld [vmem:[#allocation2 + $0x20] sm:$0xff] }
  0x23   :  { %v70_v19 = vpack.c.bf16 %v805_v16, %v799_v15  ;;  %v77_v20 = vpack.c.bf16 %v809_v18, %v807_v17  ;;  %v821_v22 = vld [vmem:[#allocation2 + $0x28] sm:$0xff]  ;;  %v823_v23 = vld [vmem:[#allocation2 + $0x90] sm:$0xff]  ;;  %v825_v24 = vld [vmem:[#allocation2 + $0x98] sm:$0xff] }
  0x24   :  { %515 = vmatpush3.bf16.msra.mxu0 %v606_v2  ;;  %589 = vmatpush3.bf16.msra.mxu1 %v606_v2  ;;  %v71_v25 = vpack.c.bf16 %v821_v22, %v815_v21  ;;  %v78_v26 = vpack.c.bf16 %v825_v24, %v823_v23  ;;  %v831_v27 = vld [vmem:[#allocation2 + $0x30] sm:$0xff]  ;;  %v837_v28 = vld [vmem:[#allocation2 + $0x38] sm:$0xff]  ;;  %v839_v29 = vld [vmem:[#allocation2 + $0xa0] sm:$0xff] }
  0x25   :  { %516 = vmatprep.subr.bf16.mxu0 %v735_v0  ;;  %582 = vmatprep.subr.bf16.mxu1 %v735_v0  ;;  %v841_v30 = vld [vmem:[#allocation2 + $0xa8] sm:$0xff]  ;;  %v72_v31 = vpack.c.bf16 %v837_v28, %v831_v27  ;;  %v847_v33 = vld [vmem:[#allocation2 + $0x40] sm:$0xff]  ;;  %v855_v35 = vld [vmem:[#allocation2 + $0xb0] sm:$0xff] }
  0x26   :  { %v79_v32 = vpack.c.bf16 %v841_v30, %v839_v29  ;;  %v853_v34 = vld [vmem:[#allocation2 + $0x48] sm:$0xff]  ;;  %v857_v36 = vld [vmem:[#allocation2 + $0xb8] sm:$0xff]  ;;  %v867_v39 = vld [vmem:[#allocation2 + $0x50] sm:$0xff] }
  0x27   :  { %v73_v37 = vpack.c.bf16 %v853_v34, %v847_v33  ;;  %v80_v38 = vpack.c.bf16 %v857_v36, %v855_v35  ;;  %v869_v40 = vld [vmem:[#allocation2 + $0x58] sm:$0xff]  ;;  %v871_v41 = vld [vmem:[#allocation2 + $0xc0] sm:$0xff]  ;;  %v881_v45 = vld [vmem:[#allocation2 + $0x68] sm:$0xff] }
  0x28   :  { %517 = vmatpush3.bf16.msra.mxu0 %v607_v3  ;;  %590 = vmatpush3.bf16.msra.mxu1 %v607_v3  ;;  %v74_v42 = vpack.c.bf16 %v869_v40, %v867_v39  ;;  %v81_v43 = vpack.c.bf16 %v871_v41, %v871_v41  ;;  %v879_v44 = vld [vmem:[#allocation2 + $0x60] sm:$0xff] }
  0x29   :  { %518 = vmatprep.subr.bf16.mxu0 %v735_v0  ;;  %583 = vmatprep.subr.bf16.mxu1 %v735_v0  ;;  %v75_v46 = vpack.c.bf16 %v881_v45, %v879_v44  ;;  %v888_v47 = vld [vmem:[%s1024_s2] ss:$0 sm:$0xff]  ;;  %s737_s2 = smov [#allocation7]  }
  0x2a   :  { %s469_s26 = sshll.u32 %s737_s2, 4  ;;  %s470_s26 = int_to_ptr.vmem [resolvable:$true] %s469_s26 }
  0x2b   :  { %s703_s27 = scalar_lea.vmem %s470_s26, 3200  ;;  %p708_p11 = scmp.lt.s32.totalorder %s470_s26, %s470_s26 }
  0x2c   :  { %519 = vmatpush3.bf16.msra.mxu0 %v608_v4  ;;  %591 = vmatpush3.bf16.msra.mxu1 %v608_v4  ;;  %p704_p10 = scmp.ne.s32.totalorder %s470_s26, %s703_s27  ;;  %p709_p12 = scmp.lt.s32.totalorder %s703_s27, %s703_s27 }
  0x2d   :  { %520 = vmatprep.subr.bf16.mxu0 %v735_v0  ;;  %584 = vmatprep.subr.bf16.mxu1 %v735_v0 }
  0x2e   :  { %p710_p13 = por %p709_p12, %p708_p11 }
  0x30   :  { %521 = vmatpush3.bf16.msra.mxu0 %v609_v5  ;;  %592 = vmatpush3.bf16.msra.mxu1 %v609_v5  ;;  %p711_p0 = pnand %p710_p13, %p704_p10 }
  0x31   :  { %522 = vmatprep.subr.bf16.mxu0 %v735_v0  ;;  %585 = vmatprep.subr.bf16.mxu1 %v735_v0 }
  0x34   :  { %523 = vmatpush3.bf16.msra.mxu0 %v610_v6  ;;  %593 = vmatpush3.bf16.msra.mxu1 %v610_v6 }
  0x35   :  { %524 = vmatprep.subr.bf16.mxu0 %v735_v0  ;;  %586 = vmatprep.subr.bf16.mxu1 %v735_v0 }
  0x38   :  { %525 = vmatpush3.bf16.msra.mxu0 %v611_v7  ;;  %594 = vmatpush3.bf16.msra.mxu1 %v611_v7 }
  0x39   :  { %526 = vmatprep.subr.bf16.mxu0 %v735_v0  ;;  %587 = vmatprep.subr.bf16.mxu1 %v735_v0 }
  0x3c   :  { %527 = vmatpush3.bf16.msra.mxu0 %v612_v8  ;;  %595 = vmatpush3.bf16.msra.mxu1 %v612_v8 }
  0x3f   :  { %529 = vmatmul.mubr.bf16.vlgmr.msra.gmra.mxu0 %v69_v13  ;;  %557 = vmatmul.mubr.bf16.vlgmr.msra.gmra.mxu1 %v76_v14 }
  0x40   :  { %532 = vmatprep.mubr.msk.bf16.mxu0 %vm736_vm0, %v735_v0  ;;  %560 = vmatprep.mubr.msk.bf16.mxu1 %vm736_vm0, %v735_v0 }
  0x47   :  { %533 = vmatmul.mubr.bf16.gmra.mxu0 %v70_v19  ;;  %561 = vmatmul.mubr.bf16.gmra.mxu1 %v77_v20 }
  0x48   :  { %536 = vmatprep.mubr.msk.bf16.mxu0 %vm736_vm0, %v735_v0  ;;  %564 = vmatprep.mubr.msk.bf16.mxu1 %vm736_vm0, %v735_v0 }
  0x4f   :  { %537 = vmatmul.mubr.bf16.gmra.mxu0 %v71_v25  ;;  %565 = vmatmul.mubr.bf16.gmra.mxu1 %v78_v26 }
  0x50   :  { %540 = vmatprep.mubr.msk.bf16.mxu0 %vm736_vm0, %v735_v0  ;;  %568 = vmatprep.mubr.msk.bf16.mxu1 %vm736_vm0, %v735_v0 }
  0x57   :  { %541 = vmatmul.mubr.bf16.gmra.mxu0 %v72_v31  ;;  %569 = vmatmul.mubr.bf16.gmra.mxu1 %v79_v32 }
  0x58   :  { %544 = vmatprep.mubr.msk.bf16.mxu0 %vm736_vm0, %v735_v0  ;;  %572 = vmatprep.mubr.msk.bf16.mxu1 %vm736_vm0, %v735_v0 }
  0x5f   :  { %545 = vmatmul.mubr.bf16.gmra.mxu0 %v73_v37  ;;  %573 = vmatmul.mubr.bf16.gmra.mxu1 %v80_v38 }
  0x60   :  { %548 = vmatprep.mubr.msk.bf16.mxu0 %vm736_vm0, %v735_v0  ;;  %576 = vmatprep.mubr.msk.bf16.mxu1 %vm736_vm0, %v735_v0 }
  0x67   :  { %549 = vmatmul.mubr.bf16.gmra.mxu0 %v74_v42  ;;  %577 = vmatmul.mubr.bf16.gmra.mxu1 %v81_v43 }
  0x68   :  { %552 = vmatprep.mubr.msk.bf16.mxu0 %vm736_vm0, %v735_v0 }
  0x6f   :  { %553 = vmatmul.mubr.bf16.gmra.mxu0 %v75_v46 }
  0xff   :  { %v187_v48 = vpop.f32.mrf.mxu0  ;;  %v243_v49 = vpop.f32.mrf.mxu1 }
 0x100   :  { %v188_v50 = vadd.f32 %v888_v47, %v187_v48  ;;  %v244_v51 = vadd.f32 %v888_v47, %v243_v49 }
 0x101   :  { %v530_v52 = vpop.f32.mrf.mxu0  ;;  %v558_v53 = vpop.f32.mrf.mxu1 }
 0x102   :  { %v314_v54 = vmul.f32 0.70710677, %v188_v50  ;;  %v328_v55 = vmul.f32 0.70710677, %v244_v51  ;;  %v289_v52 = vmul.f32 0.5, %v188_v50 }
 0x103   :  { %v190_v56 = vpop.f32.mrf.mxu0  ;;  %v246_v57 = vpop.f32.mrf.mxu1 }
 0x104   :  { %613 = verf.f32 %v314_v54  ;;  %v191_v58 = vadd.f32 %v888_v47, %v190_v56  ;;  %v247_v59 = vadd.f32 %v888_v47, %v246_v57 }
 0x105   :  { %615 = verf.f32 %v328_v55  ;;  %v531_v60 = vpop.f32.mrf.mxu0  ;;  %v559_v61 = vpop.f32.mrf.mxu1  ;;  %v303_v55 = vmul.f32 0.5, %v244_v51 }
 0x106   :  { %v315_v62 = vmul.f32 0.70710677, %v191_v58  ;;  %v329_v63 = vmul.f32 0.70710677, %v247_v59 }
 0x107   :  { %v195_v0 = vpop.f32.mrf.mxu0  ;;  %v251_v1 = vpop.f32.mrf.mxu1 }
 0x108   :  { %617 = verf.f32 %v315_v62  ;;  %v895_v2 = vadd.f32 %v888_v47, %v195_v0  ;;  %v898_v3 = vadd.f32 %v888_v47, %v251_v1 }
 0x109   :  { %619 = verf.f32 %v329_v63  ;;  %v534_v4 = vpop.f32.mrf.mxu0  ;;  %v562_v5 = vpop.f32.mrf.mxu1 }
 0x10a   :  { %v316_v6 = vmul.f32 0.70710677, %v895_v2  ;;  %v330_v7 = vmul.f32 0.70710677, %v898_v3 }
 0x10b   :  { %v198_v8 = vpop.f32.mrf.mxu0  ;;  %v254_v13 = vpop.f32.mrf.mxu1 }
 0x10c   :  { %621 = verf.f32 %v316_v6  ;;  %v903_v14 = vadd.f32 %v888_v47, %v198_v8  ;;  %v906_v19 = vadd.f32 %v888_v47, %v254_v13 }
 0x10d   :  { %623 = verf.f32 %v330_v7  ;;  %v535_v20 = vpop.f32.mrf.mxu0  ;;  %v563_v25 = vpop.f32.mrf.mxu1  ;;  %v290_v7 = vmul.f32 0.5, %v191_v58 }
 0x10e   :  { %v317_v26 = vmul.f32 0.70710677, %v903_v14  ;;  %v331_v31 = vmul.f32 0.70710677, %v906_v19  ;;  %v304_v25 = vmul.f32 0.5, %v247_v59 }
 0x10f   :  { %v203_v32 = vpop.f32.mrf.mxu0  ;;  %v259_v37 = vpop.f32.mrf.mxu1 }
 0x110   :  { %625 = verf.f32 %v317_v26  ;;  %v911_v38 = vadd.f32 %v888_v47, %v203_v32  ;;  %v914_v42 = vadd.f32 %v888_v47, %v259_v37 }
 0x111   :  { %v614_v43 = vpop.eup %613  ;;  %627 = verf.f32 %v331_v31  ;;  %v538_v46 = vpop.f32.mrf.mxu0 }
 0x112   :  { %v566_v48 = vpop.f32.mrf.mxu1  ;;  %v616_v49 = vpop.eup %615  ;;  %v364_v53 = vadd.f32 1.0, %v614_v43  ;;  %v318_v54 = vmul.f32 0.70710677, %v911_v38  ;;  %v332_v57 = vmul.f32 0.70710677, %v914_v42 }
 0x113   :  { %v378_v56 = vadd.f32 1.0, %v616_v49  ;;  %v206_v60 = vpop.f32.mrf.mxu0 }
 0x114   :  { %v262_v61 = vpop.f32.mrf.mxu1  ;;  %v389_v62 = vmul.f32 %v364_v53, %v289_v52  ;;  %629 = verf.f32 %v318_v54  ;;  %v919_v63 = vadd.f32 %v888_v47, %v206_v60  ;;  %v291_v53 = vmul.f32 0.5, %v895_v2 }
 0x115   :  { %v922_v0 = vadd.f32 %v888_v47, %v262_v61  ;;  %v618_v1 = vpop.eup %617  ;;  %v403_v4 = vmul.f32 %v378_v56, %v303_v55  ;;  %631 = verf.f32 %v332_v57  ;;  %v539_v50 = vpop.f32.mrf.mxu0  ;;  %v305_v57 = vmul.f32 0.5, %v898_v3 }
 0x116   :  { %v567_v5 = vpop.f32.mrf.mxu1  ;;  %v620_v6 = vpop.eup %619  ;;  %v414_v51 = vadd.f32 %v389_v62, %v785_v9  ;;  %v365_v8 = vadd.f32 1.0, %v618_v1  ;;  %v319_v13 = vmul.f32 0.70710677, %v919_v63 }
 0x117   :  { %v428_v20 = vadd.f32 %v403_v4, %v789_v11  ;;  %v379_v26 = vadd.f32 1.0, %v620_v6  ;;  %v333_v31 = vmul.f32 0.70710677, %v922_v0  ;;  %v211_v32 = vpop.f32.mrf.mxu0 }
 0x118   :  { %v267_v37 = vpop.f32.mrf.mxu1  ;;  %439 = vst [vmem:[#allocation7] sm:$0xff] %v414_v51  ;;  %v390_v43 = vmul.f32 %v365_v8, %v290_v7  ;;  %633 = verf.f32 %v319_v13  ;;  %v929_v46 = vadd.f32 %v888_v47, %v211_v32  ;;  %v292_v7 = vmul.f32 0.5, %v903_v14 }
 0x119   :  { %v932_v9 = vadd.f32 %v888_v47, %v267_v37  ;;  %v622_v58 = vpop.eup %621  ;;  %453 = vst [vmem:[#allocation7 + $0x70] sm:$0xff] %v428_v20  ;;  %v404_v48 = vmul.f32 %v379_v26, %v304_v25  ;;  %635 = verf.f32 %v333_v31  ;;  %v542_v11 = vpop.f32.mrf.mxu0  ;;  %v306_v25 = vmul.f32 0.5, %v906_v19 }
 0x11a   :  { %v570_v59 = vpop.f32.mrf.mxu1  ;;  %v624_v49 = vpop.eup %623  ;;  %v415_v52 = vadd.f32 %v390_v43, %v787_v10  ;;  %v366_v54 = vadd.f32 1.0, %v622_v58  ;;  %v320_v55 = vmul.f32 0.70710677, %v929_v46 }
 0x11b   :  { %v429_v56 = vadd.f32 %v404_v48, %v791_v12  ;;  %v380_v60 = vadd.f32 1.0, %v624_v49  ;;  %v334_v61 = vmul.f32 0.70710677, %v932_v9  ;;  %v214_v62 = vpop.f32.mrf.mxu0  ;;  %v293_v49 = vmul.f32 0.5, %v911_v38 }
 0x11c   :  { %v270_v1 = vpop.f32.mrf.mxu1  ;;  %440 = vst [vmem:[#allocation7 + $0x8] sm:$0xff] %v415_v52  ;;  %v391_v4 = vmul.f32 %v366_v54, %v291_v53  ;;  %637 = verf.f32 %v320_v55  ;;  %v941_v50 = vadd.f32 %v888_v47, %v214_v62  ;;  %v307_v55 = vmul.f32 0.5, %v914_v42 }
 0x11d   :  { %v944_v10 = vadd.f32 %v888_v47, %v270_v1  ;;  %v626_v2 = vpop.eup %625  ;;  %454 = vst [vmem:[#allocation7 + $0x78] sm:$0xff] %v429_v56  ;;  %v405_v5 = vmul.f32 %v380_v60, %v305_v57  ;;  %639 = verf.f32 %v334_v61  ;;  %v543_v12 = vpop.f32.mrf.mxu0 }
 0x11e   :  { %v571_v3 = vpop.f32.mrf.mxu1  ;;  %v628_v6 = vpop.eup %627  ;;  %v416_v51 = vadd.f32 %v391_v4, %v799_v15  ;;  %v367_v8 = vadd.f32 1.0, %v626_v2  ;;  %v321_v13 = vmul.f32 0.70710677, %v941_v50  ;;  %v294_v12 = vmul.f32 0.5, %v919_v63 }
 0x11f   :  { %v430_v20 = vadd.f32 %v405_v5, %v807_v17  ;;  %v381_v26 = vadd.f32 1.0, %v628_v6  ;;  %v335_v31 = vmul.f32 0.70710677, %v944_v10  ;;  %v219_v32 = vpop.f32.mrf.mxu0 }
 0x120   :  { %v275_v37 = vpop.f32.mrf.mxu1  ;;  %441 = vst [vmem:[#allocation7 + $0x10] sm:$0xff] %v416_v51  ;;  %v392_v43 = vmul.f32 %v367_v8, %v292_v7  ;;  %641 = verf.f32 %v321_v13  ;;  %v953_v58 = vadd.f32 %v888_v47, %v219_v32  ;;  %v308_v7 = vmul.f32 0.5, %v922_v0 }
 0x121   :  { %v956_v15 = vadd.f32 %v888_v47, %v275_v37  ;;  %v630_v14 = vpop.eup %629  ;;  %455 = vst [vmem:[#allocation7 + $0x80] sm:$0xff] %v430_v20  ;;  %v406_v48 = vmul.f32 %v381_v26, %v306_v25  ;;  %643 = verf.f32 %v335_v31  ;;  %v546_v17 = vpop.f32.mrf.mxu0 }
 0x122   :  { %v574_v19 = vpop.f32.mrf.mxu1  ;;  %v632_v11 = vpop.eup %631  ;;  %v417_v59 = vadd.f32 %v392_v43, %v805_v16  ;;  %v368_v52 = vadd.f32 1.0, %v630_v14  ;;  %v322_v53 = vmul.f32 0.70710677, %v953_v58  ;;  %v295_v14 = vmul.f32 0.5, %v929_v46 }
 0x123   :  { %v431_v54 = vadd.f32 %v406_v48, %v809_v18  ;;  %v382_v56 = vadd.f32 1.0, %v632_v11  ;;  %v336_v57 = vmul.f32 0.70710677, %v956_v15  ;;  %v222_v60 = vpop.f32.mrf.mxu0  ;;  %v309_v11 = vmul.f32 0.5, %v932_v9 }
 0x124   :  { %v278_v61 = vpop.f32.mrf.mxu1  ;;  %442 = vst [vmem:[#allocation7 + $0x18] sm:$0xff] %v417_v59  ;;  %v393_v62 = vmul.f32 %v368_v52, %v293_v49  ;;  %645 = verf.f32 %v322_v53  ;;  %v965_v1 = vadd.f32 %v888_v47, %v222_v60  ;;  %v296_v60 = vmul.f32 0.5, %v941_v50 }
 0x125   :  { %v968_v16 = vadd.f32 %v888_v47, %v278_v61  ;;  %v634_v38 = vpop.eup %633  ;;  %456 = vst [vmem:[#allocation7 + $0x88] sm:$0xff] %v431_v54  ;;  %v407_v4 = vmul.f32 %v382_v56, %v307_v55  ;;  %647 = verf.f32 %v336_v57  ;;  %v547_v18 = vpop.f32.mrf.mxu0 }
 0x126   :  { %v575_v42 = vpop.f32.mrf.mxu1  ;;  %v636_v2 = vpop.eup %635  ;;  %v418_v5 = vadd.f32 %v393_v62, %v815_v21  ;;  %v369_v3 = vadd.f32 1.0, %v634_v38  ;;  %v323_v6 = vmul.f32 0.70710677, %v965_v1 }
 0x127   :  { %v432_v51 = vadd.f32 %v407_v4, %v823_v23  ;;  %v383_v8 = vadd.f32 1.0, %v636_v2  ;;  %v337_v13 = vmul.f32 0.70710677, %v968_v16  ;;  %v227_v20 = vpop.f32.mrf.mxu0  ;;  %v310_v4 = vmul.f32 0.5, %v944_v10 }
 0x128   :  { %v283_v25 = vpop.f32.mrf.mxu1  ;;  %443 = vst [vmem:[#allocation7 + $0x20] sm:$0xff] %v418_v5  ;;  %v394_v26 = vmul.f32 %v369_v3, %v294_v12  ;;  %649 = verf.f32 %v323_v6  ;;  %v977_v31 = vadd.f32 %v888_v47, %v227_v20 }
 0x129   :  { %v980_v21 = vadd.f32 %v888_v47, %v283_v25  ;;  %v638_v63 = vpop.eup %637  ;;  %457 = vst [vmem:[#allocation7 + $0x90] sm:$0xff] %v432_v51  ;;  %v408_v32 = vmul.f32 %v383_v8, %v308_v7  ;;  %651 = verf.f32 %v337_v13  ;;  %v550_v23 = vpop.f32.mrf.mxu0  ;;  %v297_v51 = vmul.f32 0.5, %v953_v58 }
 0x12a   :  { %v578_v0 = vpop.f32.mrf.mxu1  ;;  %v640_v37 = vpop.eup %639  ;;  %v419_v43 = vadd.f32 %v394_v26, %v821_v22  ;;  %v370_v48 = vadd.f32 1.0, %v638_v63  ;;  %v324_v17 = vmul.f32 0.70710677, %v977_v31  ;;  %v311_v8 = vmul.f32 0.5, %v956_v15 }
 0x12b   :  { %v433_v19 = vadd.f32 %v408_v32, %v825_v24  ;;  %v384_v59 = vadd.f32 1.0, %v640_v37  ;;  %v338_v49 = vmul.f32 0.70710677, %v980_v21  ;;  %v230_v52 = vpop.f32.mrf.mxu0  ;;  %v298_v0 = vmul.f32 0.5, %v965_v1 }
 0x12c   :  { %v286_v53 = vpop.f32.mrf.mxu1  ;;  %444 = vst [vmem:[#allocation7 + $0x28] sm:$0xff] %v419_v43  ;;  %v395_v54 = vmul.f32 %v370_v48, %v295_v14  ;;  %653 = verf.f32 %v324_v17  ;;  %v989_v55 = vadd.f32 %v888_v47, %v230_v52  ;;  %v312_v43 = vmul.f32 0.5, %v968_v16 }
 0x12d   :  { %v642_v22 = vpop.eup %641  ;;  %458 = vst [vmem:[#allocation7 + $0x98] sm:$0xff] %v433_v19  ;;  %v409_v46 = vmul.f32 %v384_v59, %v309_v11  ;;  %655 = verf.f32 %v338_v49  ;;  %v551_v56 = vpop.f32.mrf.mxu0  ;;  %v313_v49 = vmul.f32 0.5, %v980_v21 }
 0x12e   :  { %v579_v57 = vpop.f32.mrf.mxu1  ;;  %v644_v24 = vpop.eup %643  ;;  %v420_v9 = vadd.f32 %v395_v54, %v831_v27  ;;  %v371_v61 = vadd.f32 1.0, %v642_v22  ;;  %v325_v62 = vmul.f32 0.70710677, %v989_v55  ;;  %v300_v22 = vmul.f32 0.5, %v989_v55 }
 0x12f   :  { %v434_v38 = vadd.f32 %v409_v46, %v839_v29  ;;  %v385_v18 = vadd.f32 1.0, %v644_v24  ;;  %v235_v42 = vpop.f32.mrf.mxu0 }
 0x130   :  { %445 = vst [vmem:[#allocation7 + $0x30] sm:$0xff] %v420_v9  ;;  %v396_v2 = vmul.f32 %v371_v61, %v296_v60  ;;  %657 = verf.f32 %v325_v62  ;;  %v236_v5 = vadd.f32 %v888_v47, %v235_v42 }
 0x131   :  { %v646_v12 = vpop.eup %645  ;;  %459 = vst [vmem:[#allocation7 + $0xa0] sm:$0xff] %v434_v38  ;;  %v410_v3 = vmul.f32 %v385_v18, %v310_v4  ;;  %v554_v27 = vpop.f32.mrf.mxu0 }
 0x132   :  { %v648_v6 = vpop.eup %647  ;;  %v421_v50 = vadd.f32 %v396_v2, %v837_v28  ;;  %v372_v7 = vadd.f32 1.0, %v646_v12  ;;  %v326_v29 = vmul.f32 0.70710677, %v236_v5  ;;  %v301_v21 = vmul.f32 0.5, %v236_v5 }
 0x133   :  { %v435_v10 = vadd.f32 %v410_v3, %v841_v30  ;;  %v386_v13 = vadd.f32 1.0, %v648_v6  ;;  %v238_v20 = vpop.f32.mrf.mxu0 }
 0x134   :  { %446 = vst [vmem:[#allocation7 + $0x38] sm:$0xff] %v421_v50  ;;  %v397_v25 = vmul.f32 %v372_v7, %v297_v51  ;;  %659 = verf.f32 %v326_v29  ;;  %v239_v26 = vadd.f32 %v888_v47, %v238_v20 }
 0x135   :  { %v650_v63 = vpop.eup %649  ;;  %460 = vst [vmem:[#allocation7 + $0xa8] sm:$0xff] %v435_v10  ;;  %v411_v32 = vmul.f32 %v386_v13, %v311_v8  ;;  %v555_v23 = vpop.f32.mrf.mxu0 }
 0x136   :  { %v652_v28 = vpop.eup %651  ;;  %v422_v58 = vadd.f32 %v397_v25, %v847_v33  ;;  %v373_v37 = vadd.f32 1.0, %v650_v63  ;;  %v327_v30 = vmul.f32 0.70710677, %v239_v26  ;;  %v299_v33 = vmul.f32 0.5, %v977_v31 }
 0x137   :  { %v436_v15 = vadd.f32 %v411_v32, %v855_v35  ;;  %v387_v14 = vadd.f32 1.0, %v652_v28  ;;  %v302_v61 = vmul.f32 0.5, %v239_v26 }
 0x138   :  { %447 = vst [vmem:[#allocation7 + $0x40] sm:$0xff] %v422_v58  ;;  %v398_v48 = vmul.f32 %v373_v37, %v298_v0  ;;  %661 = verf.f32 %v327_v30 }
 0x139   :  { %v654_v47 = vpop.eup %653  ;;  %461 = vst [vmem:[#allocation7 + $0xb0] sm:$0xff] %v436_v15  ;;  %v412_v17 = vmul.f32 %v387_v14, %v312_v43 }
 0x13a   :  { %v656_v19 = vpop.eup %655  ;;  %v423_v11 = vadd.f32 %v398_v48, %v853_v34  ;;  %v374_v59 = vadd.f32 1.0, %v654_v47 }
 0x13b   :  { %v437_v1 = vadd.f32 %v412_v17, %v857_v36  ;;  %v388_v35 = vadd.f32 1.0, %v656_v19 }
 0x13c   :  { %448 = vst [vmem:[#allocation7 + $0x48] sm:$0xff] %v423_v11  ;;  %v399_v16 = vmul.f32 %v374_v59, %v299_v33 }
 0x13d   :  { %v658_v52 = vpop.eup %657  ;;  %462 = vst [vmem:[#allocation7 + $0xb8] sm:$0xff] %v437_v1  ;;  %v413_v53 = vmul.f32 %v388_v35, %v313_v49 }
 0x13e   :  { %v424_v54 = vadd.f32 %v399_v16, %v867_v39  ;;  %v375_v46 = vadd.f32 1.0, %v658_v52 }
 0x13f   :  { %v438_v34 = vadd.f32 %v413_v53, %v871_v41 }
 0x140   :  { %449 = vst [vmem:[#allocation7 + $0x50] sm:$0xff] %v424_v54  ;;  %v400_v31 = vmul.f32 %v375_v46, %v300_v22 }
 0x141   :  { %v660_v56 = vpop.eup %659  ;;  %463 = vst [vmem:[#allocation7 + $0xc0] sm:$0xff] %v438_v34 }
 0x142   :  { %v425_v36 = vadd.f32 %v400_v31, %v869_v40  ;;  %v376_v57 = vadd.f32 1.0, %v660_v56 }
 0x144   :  { %450 = vst [vmem:[#allocation7 + $0x58] sm:$0xff] %v425_v36  ;;  %v401_v24 = vmul.f32 %v376_v57, %v301_v21 }
 0x145   :  { %v662_v9 = vpop.eup %661 }
 0x146   :  { %v426_v60 = vadd.f32 %v401_v24, %v879_v44  ;;  %v377_v39 = vadd.f32 1.0, %v662_v9 }
 0x148   :  { %451 = vst [vmem:[#allocation7 + $0x60] sm:$0xff] %v426_v60  ;;  %v402_v55 = vmul.f32 %v377_v39, %v302_v61 }
 0x14a   :  { %v427_v41 = vadd.f32 %v402_v55, %v881_v45 }
 0x14c   :  { %452 = vst [vmem:[#allocation7 + $0x68] sm:$0xff] %v427_v41 }
 0x14d   :  { %714 = shalt.err (!%p711_p0)
}
 0x14e   :  { %475 = dma.vmem_to_hbm [thread:$0]  %s470_s26, 3200, %s1025_s3, [#allocation4], %s730_s15, %s730_s15, %s731_s16  }
 0x14f   :  { %727 = dma.done.wait [#allocation4], 3200  }
 0x150   :  { %728 = vsyncadd [#allocation4], 4294964096 }
 0x151   :  { %479 = vsyncpa [#allocation3], 1 }
 0x152   :  { %480 = vsyncpa [#allocation6], 1 }
 0x153   :  { %481 = vsyncpa [#allocation4], 1 }

</bundles_post_ra>
